<compile_context>
chip_gen: v7x
topology: tpu7x:2x2x1
jax: 0.10.0
libtpu: 0.0.40
codegen_flags: <defaults>
</compile_context>

<pallas_src>
import functools

import jax
import jax.numpy as jnp
from jax import lax
from jax.experimental import pallas as pl
from jax.experimental.pallas import tpu as pltpu


def _attention_kernel(x_ref, ctx_ref, wq_ref, wkv_ref, wo_ref, b_ref, o_ref,
                      *, heads, dim_head):
    inner = heads * dim_head

    x = x_ref[0]        # (N, Dq)     bf16
    ctx = ctx_ref[0]    # (M, Dc)     bf16
    wq = wq_ref[...]    # (Dq, H*d)   bf16, softmax scale already folded in
    wkv = wkv_ref[...]  # (Dc, 2*H*d) bf16
    wo = wo_ref[...]    # (H*d, Dq)   bf16
    bias = b_ref[...]   # (1, Dq)     f32

    # Full-width projections (single MXU matmuls, f32 accumulation).
    q = jnp.dot(x, wq, preferred_element_type=jnp.float32)       # (N, H*d) f32
    kv = jnp.dot(ctx, wkv, preferred_element_type=jnp.float32)   # (M, 2*H*d) f32
    k = kv[:, :inner]                                            # (M, H*d)
    v = kv[:, inner:]                                            # (M, H*d)

    # Per-head attention, statically unrolled over heads (H is small).
    head_outs = []
    for h in range(heads):
        sl = slice(h * dim_head, (h + 1) * dim_head)
        qh = q[:, sl].astype(jnp.bfloat16)   # (N, d)
        kh = k[:, sl].astype(jnp.bfloat16)   # (M, d)
        vh = v[:, sl].astype(jnp.bfloat16)   # (M, d)

        # sim = qh @ kh^T without forming a transposed copy of kh.
        sim = lax.dot_general(qh, kh, (((1,), (1,)), ((), ())),
                              preferred_element_type=jnp.float32)  # (N, M) f32

        # Softmax over the context axis (kept in f32).
        sim = sim - jnp.max(sim, axis=-1, keepdims=True)
        p = jnp.exp(sim)
        attn = p * pl.reciprocal(jnp.sum(p, axis=-1, keepdims=True), approx=True)

        head_outs.append(
            jnp.dot(attn.astype(jnp.bfloat16), vh,
                    preferred_element_type=jnp.float32))           # (N, d) f32

    # Single full-width output projection + bias; one store per grid step.
    o = jnp.concatenate(head_outs, axis=-1).astype(jnp.bfloat16)   # (N, H*d)
    out = jnp.dot(o, wo, preferred_element_type=jnp.float32) + bias  # (N, Dq) f32
    o_ref[0] = out.astype(o_ref.dtype)


def attention_pallas(x, context, wq, wkv, wo, bo, *, heads, dim_head):
    """Fused Perceiver-IO Attention forward (mask=None path).

    x:       (B, N, Dq) float32
    context: (B, M, Dc) float32
    wq:      (Dq, H*d)        -- to_q weight, (in, out) layout
    wkv:     (Dc, 2*H*d)      -- to_kv weight, (in, out) layout
    wo:      (H*d, Dq)        -- to_out weight, (in, out) layout
    bo:      (Dq,)            -- to_out bias
    """
    B, N, Dq = x.shape
    _, M, Dc = context.shape
    inner = heads * dim_head
    scale = float(dim_head) ** (-0.5)

    # Host-side prep: fold the softmax scale into Wq, cast MXU operands to bf16
    # (halves DMA/VMEM bytes), keep original lane-dense layouts (no transposes).
    x_bf = x.astype(jnp.bfloat16)
    ctx_bf = context.astype(jnp.bfloat16)
    wq_bf = (wq * scale).astype(jnp.bfloat16)
    wkv_bf = wkv.astype(jnp.bfloat16)
    wo_bf = wo.astype(jnp.bfloat16)
    bo2 = bo.reshape(1, Dq).astype(jnp.float32)

    kernel = functools.partial(_attention_kernel, heads=heads, dim_head=dim_head)

    out = pl.pallas_call(
        kernel,
        out_shape=jax.ShapeDtypeStruct((B, N, Dq), jnp.float32),
        grid_spec=pltpu.PrefetchScalarGridSpec(
            num_scalar_prefetch=0,
            grid=(B,),  # one batch element per step; heads handled in-body
            in_specs=[
                pl.BlockSpec((1, N, Dq), lambda b: (b, 0, 0)),        # x
                pl.BlockSpec((1, M, Dc), lambda b: (b, 0, 0)),        # context
                pl.BlockSpec((Dq, inner), lambda b: (0, 0)),          # Wq (scaled)
                pl.BlockSpec((Dc, 2 * inner), lambda b: (0, 0)),      # Wkv
                pl.BlockSpec((inner, Dq), lambda b: (0, 0)),          # Wo
                pl.BlockSpec((1, Dq), lambda b: (0, 0)),              # bias
            ],
            out_specs=pl.BlockSpec((1, N, Dq), lambda b: (b, 0, 0)),
        ),
        compiler_params=pltpu.CompilerParams(
            dimension_semantics=("parallel",)),
    )(x_bf, ctx_bf, wq_bf, wkv_bf, wo_bf, bo2)
    return out


def attention_reference(x, context, wq, wkv, wo, bo, *, heads, dim_head):
    """Pure-JAX f32 reference matching the PyTorch forward (mask=None)."""
    B, N, Dq = x.shape
    _, M, Dc = context.shape
    H, d = heads, dim_head
    inner = H * d
    scale = float(dim_head) ** (-0.5)

    q = x @ wq                       # (B, N, H*d)
    kv = context @ wkv               # (B, M, 2*H*d)
    k, v = kv[..., :inner], kv[..., inner:]

    def split_heads(t, L):
        return t.reshape(B, L, H, d).transpose(0, 2, 1, 3)  # (B, H, L, d)

    qh, kh, vh = split_heads(q, N), split_heads(k, M), split_heads(v, M)
    sim = jnp.einsum('bhid,bhjd->bhij', qh, kh) * scale
    attn = jax.nn.softmax(sim, axis=-1)
    o = jnp.einsum('bhij,bhjd->bhid', attn, vh)              # (B, H, N, d)
    o = o.transpose(0, 2, 1, 3).reshape(B, N, inner)
    return o @ wo + bo


if __name__ == "__main__":
    # small shapes consistent with the module
    B, N, M = 2, 8, 16
    query_dim, context_dim = 32, 32
    heads, dim_head = 4, 16
    inner = heads * dim_head

    key = jax.random.PRNGKey(0)
    kx, kc, k1, k2, k3, k4 = jax.random.split(key, 6)

    x = jax.random.normal(kx, (B, N, query_dim), dtype=jnp.float32)
    context = jax.random.normal(kc, (B, M, context_dim), dtype=jnp.float32)

    # deterministic parameter init ((in, out) layout, Linear-style scaling)
    wq = jax.random.normal(k1, (query_dim, inner), jnp.float32) / jnp.sqrt(query_dim)
    wkv = jax.random.normal(k2, (context_dim, 2 * inner), jnp.float32) / jnp.sqrt(context_dim)
    wo = jax.random.normal(k3, (inner, query_dim), jnp.float32) / jnp.sqrt(inner)
    bo = jax.random.normal(k4, (query_dim,), jnp.float32) * 0.01

    out = attention_pallas(x, context, wq, wkv, wo, bo,
                           heads=heads, dim_head=dim_head)
    out = jax.block_until_ready(out)

    ref = attention_reference(x, context, wq, wkv, wo, bo,
                              heads=heads, dim_head=dim_head)
    assert out.shape == (B, N, query_dim)

    # bf16 MXU operands (f32 accumulation) => compare against the f32 reference
    # with a correspondingly looser tolerance.
    max_err = float(jnp.max(jnp.abs(out - ref)))
    assert jnp.allclose(out, ref, atol=1e-1, rtol=1e-1), (
        f"max abs err = {max_err}")

    print("KERNEL_OK")
</pallas_src>

<mosaic_0001>
module attributes {stable_mosaic.version = 11 : i64} {
  func.func @_attention_kernel(%arg0: i32, %arg1: memref<1x8x32xbf16, #tpu.memory_space<vmem>>, %arg2: memref<1x16x32xbf16, #tpu.memory_space<vmem>>, %arg3: memref<32x64xbf16, #tpu.memory_space<vmem>>, %arg4: memref<32x128xbf16, #tpu.memory_space<vmem>>, %arg5: memref<64x32xbf16, #tpu.memory_space<vmem>>, %arg6: memref<1x32xf32, #tpu.memory_space<vmem>>, %arg7: memref<1x8x32xf32, #tpu.memory_space<vmem>>) attributes {dimension_semantics = [#tpu.dimension_semantics<parallel>], iteration_bounds = array<i64: 2>, scalar_prefetch = 0 : i64, scratch_operands = 0 : i64, tpu.core_type = #tpu.core_type<tc>, window_params = [{transform_indices = @transform_0, window_bounds = array<i64: 1, 8, 32>}, {transform_indices = @transform_1, window_bounds = array<i64: 1, 16, 32>}, {pipeline_mode = #tpu.pipeline_mode<synchronous>, transform_indices = @transform_2, window_bounds = array<i64: 32, 64>}, {pipeline_mode = #tpu.pipeline_mode<synchronous>, transform_indices = @transform_3, window_bounds = array<i64: 32, 128>}, {pipeline_mode = #tpu.pipeline_mode<synchronous>, transform_indices = @transform_4, window_bounds = array<i64: 64, 32>}, {pipeline_mode = #tpu.pipeline_mode<synchronous>, transform_indices = @transform_5, window_bounds = array<i64: 1, 32>}, {transform_indices = @transform_6, window_bounds = array<i64: 1, 8, 32>}]} {
    %c0 = arith.constant 0 : index
    %c0_0 = arith.constant 0 : index
    %c0_1 = arith.constant 0 : index
    %0 = vector.load %arg1[%c0, %c0_0, %c0_1] : memref<1x8x32xbf16, #tpu.memory_space<vmem>>, vector<1x8x32xbf16>
    %1 = vector.shape_cast %0 : vector<1x8x32xbf16> to vector<8x32xbf16>
    %c0_2 = arith.constant 0 : index
    %c0_3 = arith.constant 0 : index
    %c0_4 = arith.constant 0 : index
    %2 = vector.load %arg2[%c0_2, %c0_3, %c0_4] : memref<1x16x32xbf16, #tpu.memory_space<vmem>>, vector<1x16x32xbf16>
    %3 = vector.shape_cast %2 : vector<1x16x32xbf16> to vector<16x32xbf16>
    %c0_5 = arith.constant 0 : index
    %c0_6 = arith.constant 0 : index
    %4 = vector.load %arg3[%c0_5, %c0_6] : memref<32x64xbf16, #tpu.memory_space<vmem>>, vector<32x64xbf16>
    %c0_7 = arith.constant 0 : index
    %c0_8 = arith.constant 0 : index
    %5 = vector.load %arg4[%c0_7, %c0_8] : memref<32x128xbf16, #tpu.memory_space<vmem>>, vector<32x128xbf16>
    %c0_9 = arith.constant 0 : index
    %c0_10 = arith.constant 0 : index
    %6 = vector.load %arg5[%c0_9, %c0_10] : memref<64x32xbf16, #tpu.memory_space<vmem>>, vector<64x32xbf16>
    %c0_11 = arith.constant 0 : index
    %c0_12 = arith.constant 0 : index
    %7 = vector.load %arg6[%c0_11, %c0_12] : memref<1x32xf32, #tpu.memory_space<vmem>>, vector<1x32xf32>
    %cst = arith.constant dense<0.000000e+00> : vector<8x64xf32>
    %8 = tpu.matmul %1, %4, %cst {dimension_numbers = #tpu.dot_dimension_numbers<[1], [0], [0], [1], [0, 0, 1, 1], [], []>} : vector<8x32xbf16>, vector<32x64xbf16>, vector<8x64xf32> -> vector<8x64xf32>
    %cst_13 = arith.constant dense<0.000000e+00> : vector<16x128xf32>
    %9 = tpu.matmul %3, %5, %cst_13 {dimension_numbers = #tpu.dot_dimension_numbers<[1], [0], [0], [1], [0, 0, 1, 1], [], []>} : vector<16x32xbf16>, vector<32x128xbf16>, vector<16x128xf32> -> vector<16x128xf32>
    %10 = vector.extract_strided_slice %9 {offsets = [0, 0], sizes = [16, 64], strides = [1, 1]} : vector<16x128xf32> to vector<16x64xf32>
    %11 = vector.extract_strided_slice %9 {offsets = [0, 64], sizes = [16, 64], strides = [1, 1]} : vector<16x128xf32> to vector<16x64xf32>
    %12 = vector.extract_strided_slice %8 {offsets = [0, 0], sizes = [8, 16], strides = [1, 1]} : vector<8x64xf32> to vector<8x16xf32>
    %13 = arith.truncf %12 : vector<8x16xf32> to vector<8x16xbf16>
    %14 = vector.extract_strided_slice %10 {offsets = [0, 0], sizes = [16, 16], strides = [1, 1]} : vector<16x64xf32> to vector<16x16xf32>
    %15 = arith.truncf %14 : vector<16x16xf32> to vector<16x16xbf16>
    %16 = vector.extract_strided_slice %11 {offsets = [0, 0], sizes = [16, 16], strides = [1, 1]} : vector<16x64xf32> to vector<16x16xf32>
    %17 = arith.truncf %16 : vector<16x16xf32> to vector<16x16xbf16>
    %cst_14 = arith.constant dense<0.000000e+00> : vector<8x16xf32>
    %18 = tpu.matmul %13, %15, %cst_14 {dimension_numbers = #tpu.dot_dimension_numbers<[1], [1], [0], [0], [0, 0, 1, 0], [], []>} : vector<8x16xbf16>, vector<16x16xbf16>, vector<8x16xf32> -> vector<8x16xf32>
    %cst_15 = arith.constant dense<0xFF800000> : vector<8xf32>
    %19 = vector.multi_reduction <maximumf>, %18, %cst_15 [1] : vector<8x16xf32> to vector<8xf32>
    %20 = vector.shape_cast %19 : vector<8xf32> to vector<8x1xf32>
    %21 = vector.broadcast %20 : vector<8x1xf32> to vector<8x16xf32>
    %22 = arith.subf %18, %21 : vector<8x16xf32>
    %23 = math.exp %22 : vector<8x16xf32>
    %cst_16 = arith.constant dense<0.000000e+00> : vector<8xf32>
    %24 = vector.multi_reduction <add>, %23, %cst_16 [1] : vector<8x16xf32> to vector<8xf32>
    %25 = vector.shape_cast %24 : vector<8xf32> to vector<8x1xf32>
    %26 = tpu.reciprocal %25 {approx = true} : vector<8x1xf32> -> vector<8x1xf32>
    %27 = vector.broadcast %26 : vector<8x1xf32> to vector<8x16xf32>
    %28 = arith.mulf %23, %27 : vector<8x16xf32>
    %29 = arith.truncf %28 : vector<8x16xf32> to vector<8x16xbf16>
    %cst_17 = arith.constant dense<0.000000e+00> : vector<8x16xf32>
    %30 = tpu.matmul %29, %17, %cst_17 {dimension_numbers = #tpu.dot_dimension_numbers<[1], [0], [0], [1], [0, 0, 1, 1], [], []>} : vector<8x16xbf16>, vector<16x16xbf16>, vector<8x16xf32> -> vector<8x16xf32>
    %31 = vector.extract_strided_slice %8 {offsets = [0, 16], sizes = [8, 16], strides = [1, 1]} : vector<8x64xf32> to vector<8x16xf32>
    %32 = arith.truncf %31 : vector<8x16xf32> to vector<8x16xbf16>
    %33 = vector.extract_strided_slice %10 {offsets = [0, 16], sizes = [16, 16], strides = [1, 1]} : vector<16x64xf32> to vector<16x16xf32>
    %34 = arith.truncf %33 : vector<16x16xf32> to vector<16x16xbf16>
    %35 = vector.extract_strided_slice %11 {offsets = [0, 16], sizes = [16, 16], strides = [1, 1]} : vector<16x64xf32> to vector<16x16xf32>
    %36 = arith.truncf %35 : vector<16x16xf32> to vector<16x16xbf16>
    %cst_18 = arith.constant dense<0.000000e+00> : vector<8x16xf32>
    %37 = tpu.matmul %32, %34, %cst_18 {dimension_numbers = #tpu.dot_dimension_numbers<[1], [1], [0], [0], [0, 0, 1, 0], [], []>} : vector<8x16xbf16>, vector<16x16xbf16>, vector<8x16xf32> -> vector<8x16xf32>
    %cst_19 = arith.constant dense<0xFF800000> : vector<8xf32>
    %38 = vector.multi_reduction <maximumf>, %37, %cst_19 [1] : vector<8x16xf32> to vector<8xf32>
    %39 = vector.shape_cast %38 : vector<8xf32> to vector<8x1xf32>
    %40 = vector.broadcast %39 : vector<8x1xf32> to vector<8x16xf32>
    %41 = arith.subf %37, %40 : vector<8x16xf32>
    %42 = math.exp %41 : vector<8x16xf32>
    %cst_20 = arith.constant dense<0.000000e+00> : vector<8xf32>
    %43 = vector.multi_reduction <add>, %42, %cst_20 [1] : vector<8x16xf32> to vector<8xf32>
    %44 = vector.shape_cast %43 : vector<8xf32> to vector<8x1xf32>
    %45 = tpu.reciprocal %44 {approx = true} : vector<8x1xf32> -> vector<8x1xf32>
    %46 = vector.broadcast %45 : vector<8x1xf32> to vector<8x16xf32>
    %47 = arith.mulf %42, %46 : vector<8x16xf32>
    %48 = arith.truncf %47 : vector<8x16xf32> to vector<8x16xbf16>
    %cst_21 = arith.constant dense<0.000000e+00> : vector<8x16xf32>
    %49 = tpu.matmul %48, %36, %cst_21 {dimension_numbers = #tpu.dot_dimension_numbers<[1], [0], [0], [1], [0, 0, 1, 1], [], []>} : vector<8x16xbf16>, vector<16x16xbf16>, vector<8x16xf32> -> vector<8x16xf32>
    %50 = vector.extract_strided_slice %8 {offsets = [0, 32], sizes = [8, 16], strides = [1, 1]} : vector<8x64xf32> to vector<8x16xf32>
    %51 = arith.truncf %50 : vector<8x16xf32> to vector<8x16xbf16>
    %52 = vector.extract_strided_slice %10 {offsets = [0, 32], sizes = [16, 16], strides = [1, 1]} : vector<16x64xf32> to vector<16x16xf32>
    %53 = arith.truncf %52 : vector<16x16xf32> to vector<16x16xbf16>
    %54 = vector.extract_strided_slice %11 {offsets = [0, 32], sizes = [16, 16], strides = [1, 1]} : vector<16x64xf32> to vector<16x16xf32>
    %55 = arith.truncf %54 : vector<16x16xf32> to vector<16x16xbf16>
    %cst_22 = arith.constant dense<0.000000e+00> : vector<8x16xf32>
    %56 = tpu.matmul %51, %53, %cst_22 {dimension_numbers = #tpu.dot_dimension_numbers<[1], [1], [0], [0], [0, 0, 1, 0], [], []>} : vector<8x16xbf16>, vector<16x16xbf16>, vector<8x16xf32> -> vector<8x16xf32>
    %cst_23 = arith.constant dense<0xFF800000> : vector<8xf32>
    %57 = vector.multi_reduction <maximumf>, %56, %cst_23 [1] : vector<8x16xf32> to vector<8xf32>
    %58 = vector.shape_cast %57 : vector<8xf32> to vector<8x1xf32>
    %59 = vector.broadcast %58 : vector<8x1xf32> to vector<8x16xf32>
    %60 = arith.subf %56, %59 : vector<8x16xf32>
    %61 = math.exp %60 : vector<8x16xf32>
    %cst_24 = arith.constant dense<0.000000e+00> : vector<8xf32>
    %62 = vector.multi_reduction <add>, %61, %cst_24 [1] : vector<8x16xf32> to vector<8xf32>
    %63 = vector.shape_cast %62 : vector<8xf32> to vector<8x1xf32>
    %64 = tpu.reciprocal %63 {approx = true} : vector<8x1xf32> -> vector<8x1xf32>
    %65 = vector.broadcast %64 : vector<8x1xf32> to vector<8x16xf32>
    %66 = arith.mulf %61, %65 : vector<8x16xf32>
    %67 = arith.truncf %66 : vector<8x16xf32> to vector<8x16xbf16>
    %cst_25 = arith.constant dense<0.000000e+00> : vector<8x16xf32>
    %68 = tpu.matmul %67, %55, %cst_25 {dimension_numbers = #tpu.dot_dimension_numbers<[1], [0], [0], [1], [0, 0, 1, 1], [], []>} : vector<8x16xbf16>, vector<16x16xbf16>, vector<8x16xf32> -> vector<8x16xf32>
    %69 = vector.extract_strided_slice %8 {offsets = [0, 48], sizes = [8, 16], strides = [1, 1]} : vector<8x64xf32> to vector<8x16xf32>
    %70 = arith.truncf %69 : vector<8x16xf32> to vector<8x16xbf16>
    %71 = vector.extract_strided_slice %10 {offsets = [0, 48], sizes = [16, 16], strides = [1, 1]} : vector<16x64xf32> to vector<16x16xf32>
    %72 = arith.truncf %71 : vector<16x16xf32> to vector<16x16xbf16>
    %73 = vector.extract_strided_slice %11 {offsets = [0, 48], sizes = [16, 16], strides = [1, 1]} : vector<16x64xf32> to vector<16x16xf32>
    %74 = arith.truncf %73 : vector<16x16xf32> to vector<16x16xbf16>
    %cst_26 = arith.constant dense<0.000000e+00> : vector<8x16xf32>
    %75 = tpu.matmul %70, %72, %cst_26 {dimension_numbers = #tpu.dot_dimension_numbers<[1], [1], [0], [0], [0, 0, 1, 0], [], []>} : vector<8x16xbf16>, vector<16x16xbf16>, vector<8x16xf32> -> vector<8x16xf32>
    %cst_27 = arith.constant dense<0xFF800000> : vector<8xf32>
    %76 = vector.multi_reduction <maximumf>, %75, %cst_27 [1] : vector<8x16xf32> to vector<8xf32>
    %77 = vector.shape_cast %76 : vector<8xf32> to vector<8x1xf32>
    %78 = vector.broadcast %77 : vector<8x1xf32> to vector<8x16xf32>
    %79 = arith.subf %75, %78 : vector<8x16xf32>
    %80 = math.exp %79 : vector<8x16xf32>
    %cst_28 = arith.constant dense<0.000000e+00> : vector<8xf32>
    %81 = vector.multi_reduction <add>, %80, %cst_28 [1] : vector<8x16xf32> to vector<8xf32>
    %82 = vector.shape_cast %81 : vector<8xf32> to vector<8x1xf32>
    %83 = tpu.reciprocal %82 {approx = true} : vector<8x1xf32> -> vector<8x1xf32>
    %84 = vector.broadcast %83 : vector<8x1xf32> to vector<8x16xf32>
    %85 = arith.mulf %80, %84 : vector<8x16xf32>
    %86 = arith.truncf %85 : vector<8x16xf32> to vector<8x16xbf16>
    %cst_29 = arith.constant dense<0.000000e+00> : vector<8x16xf32>
    %87 = tpu.matmul %86, %74, %cst_29 {dimension_numbers = #tpu.dot_dimension_numbers<[1], [0], [0], [1], [0, 0, 1, 1], [], []>} : vector<8x16xbf16>, vector<16x16xbf16>, vector<8x16xf32> -> vector<8x16xf32>
    %88 = tpu.concatenate %30, %49, %68, %87 in 1 : vector<8x16xf32>, vector<8x16xf32>, vector<8x16xf32>, vector<8x16xf32> -> vector<8x64xf32>
    %89 = arith.truncf %88 : vector<8x64xf32> to vector<8x64xbf16>
    %cst_30 = arith.constant dense<0.000000e+00> : vector<8x32xf32>
    %90 = tpu.matmul %89, %6, %cst_30 {dimension_numbers = #tpu.dot_dimension_numbers<[1], [0], [0], [1], [0, 0, 1, 1], [], []>} : vector<8x64xbf16>, vector<64x32xbf16>, vector<8x32xf32> -> vector<8x32xf32>
    %91 = vector.broadcast %7 : vector<1x32xf32> to vector<8x32xf32>
    %92 = arith.addf %90, %91 : vector<8x32xf32>
    %c0_31 = arith.constant 0 : index
    %c0_32 = arith.constant 0 : index
    %c0_33 = arith.constant 0 : index
    %93 = vector.load %arg7[%c0_31, %c0_32, %c0_33] : memref<1x8x32xf32, #tpu.memory_space<vmem>>, vector<1x8x32xf32>
    %94 = vector.shape_cast %93 : vector<1x8x32xf32> to vector<8x32xf32>
    %95 = vector.shape_cast %92 : vector<8x32xf32> to vector<1x8x32xf32>
    tpu.vector_store %arg7[%c0_31, %c0_32, %c0_33], %95 {strides = array<i32>} : memref<1x8x32xf32, #tpu.memory_space<vmem>>, vector<1x8x32xf32>,
    return
  }
  func.func @transform_0(%arg0: i32) -> (i32, i32, i32) {
    %c0_i32 = arith.constant 0 : i32
    %c0_i32_0 = arith.constant 0 : i32
    %c0_i32_1 = arith.constant 0 : i32
    return %arg0, %c0_i32, %c0_i32_0 : i32, i32, i32
  }
  func.func @transform_1(%arg0: i32) -> (i32, i32, i32) {
    %c0_i32 = arith.constant 0 : i32
    %c0_i32_0 = arith.constant 0 : i32
    %c0_i32_1 = arith.constant 0 : i32
    return %arg0, %c0_i32, %c0_i32_0 : i32, i32, i32
  }
  func.func @transform_2(%arg0: i32) -> (i32, i32) {
    %c0_i32 = arith.constant 0 : i32
    %c0_i32_0 = arith.constant 0 : i32
    %c0_i32_1 = arith.constant 0 : i32
    return %c0_i32, %c0_i32_0 : i32, i32
  }
  func.func @transform_3(%arg0: i32) -> (i32, i32) {
    %c0_i32 = arith.constant 0 : i32
    %c0_i32_0 = arith.constant 0 : i32
    %c0_i32_1 = arith.constant 0 : i32
    return %c0_i32, %c0_i32_0 : i32, i32
  }
  func.func @transform_4(%arg0: i32) -> (i32, i32) {
    %c0_i32 = arith.constant 0 : i32
    %c0_i32_0 = arith.constant 0 : i32
    %c0_i32_1 = arith.constant 0 : i32
    return %c0_i32, %c0_i32_0 : i32, i32
  }
  func.func @transform_5(%arg0: i32) -> (i32, i32) {
    %c0_i32 = arith.constant 0 : i32
    %c0_i32_0 = arith.constant 0 : i32
    %c0_i32_1 = arith.constant 0 : i32
    return %c0_i32, %c0_i32_0 : i32, i32
  }
  func.func @transform_6(%arg0: i32) -> (i32, i32, i32) {
    %c0_i32 = arith.constant 0 : i32
    %c0_i32_0 = arith.constant 0 : i32
    %c0_i32_1 = arith.constant 0 : i32
    return %arg0, %c0_i32, %c0_i32_0 : i32, i32, i32
  }
}

</mosaic_0001>

<bundles_post_ra>
// kernel: tpu_custom_call.1
= control target key start
LH: loop header
LB: loop body
LE: loop exit
PB: predicated region body
PF: predicated region fallthrough
CT: control target
= control target key end

     0   :  { %11 = vsyncpa [#allocation3], 0  ;;  %s1682_s0 = inlined_call_operand.hbm [shape: bf16[2,8,32], index: 0, kind: input, shape index: {}]   ;;  %s1683_s1 = inlined_call_operand.vmem [shape: bf16[2,16,32], index: 1, kind: input, shape index: {}]   ;;  %s1684_s2 = inlined_call_operand.vmem [shape: bf16[32,64], index: 2, kind: input, shape index: {}]   ;;  %s1685_s3 = inlined_call_operand.vmem [shape: bf16[32,128], index: 3, kind: input, shape index: {}]   ;;  %s1686_s4 = inlined_call_operand.vmem [shape: bf16[64,32], index: 4, kind: input, shape index: {}]   ;;  %s1687_s5 = inlined_call_operand.vmem [shape: f32[1,32], index: 5, kind: input, shape index: {}]   ;;  %s1688_s6 = inlined_call_operand.hbm [shape: f32[2,8,32], index: 6, kind: output, shape index: {}]  }
   0x1   :  { %13 = vsyncpa [#allocation3 + $0x1], 0 }
   0x2   :  { %14 = vsyncpa [#allocation4], 0 }
   0x3   :  { %16 = vsyncpa [#allocation4 + $0x1], 0  ;;  %s1409_s21 = smov 0   ;;  %s1411_s22 = smov 0  }
   0x4   :  { %s1413_s23 = smov 0   ;;  %s1415_s24 = smov 0  }
   0x5 LB: > { %s1430_s25 = sadd.s32 4294967295, %s1361_s24   ;;  %s1046_s26 = sadd.s32 4294967294, %s1361_s24   ;;  %s1361_s24 = sphi %s1415_s24, %s1703_s24   ;;  %s1357_s23 = sphi %s1413_s23, %s1702_s23   ;;  %s1353_s22 = sphi %s1411_s22, %s1701_s22   ;;  %s1349_s21 = sphi %s1409_s21, %s1700_s21  }
   0x6   : > { %s1434_s27 = sadd.s32 1, %s1361_s24   ;;  %s29_s28 = sadd.s32 1, %s1357_s23 }
   0x7   : > { %s26_s29 = ssub.s32 %s1361_s24, %s1434_s27  ;;  %p36_p0 = scmp.ne.s32.totalorder %s1357_s23, %s1353_s22 }
   0x8   : > { %p27_p1 = scmp.eq.s32.totalorder %s26_s29, 0  ;;  %p37_p2 = scmp.eq.s32.totalorder %s1361_s24, 0 }
   0x9   : > { %p42_p3 = scmp.ne.s32.totalorder %s1353_s22, %s1349_s21  ;;  %p43_p4 = scmp.eq.s32.totalorder %s1430_s25, 0 }
   0xa   : > { %s1446_s30 = scalar_select %p27_p1, %s1357_s23, %s29_s28  }
   0xb   : > { %p1448_p5 = por %p37_p2, %p36_p0  ;;  %p1452_p6 = por %p43_p4, %p42_p3 }
   0xc   : > { %p176_p7 = scmp.eq.s32.totalorder %s1430_s25, 1  ;;  %p182_p8 = scmp.eq.s32.totalorder %s1046_s26, 1 }
   0xd   : > { %p1197_p10 = scmp.lt.s32.totalorder %s1361_s24, 2  ;;  %s214_s11 = sand.u32 1, %s1357_s23  }
   0xe   : > { %p1459_p11 = por %p176_p7, %p36_p0  ;;  %p1463_p12 = por %p182_p8, %p42_p3 }
   0xf   : > { %s1050_s12 = sshll.u32 %s1361_s24, 6  ;;  %s1049_s13 = sshll.u32 %s214_s11, 2 }
  0x10   : > { %s1692_s9 = scalar_select %p1459_p11, 1, 0 }
  0x11   : > { %s1693_s10 = scalar_select %p1463_p12, 1, 0 }
  0x12   : > { %s1472_s16 = scalar_lea.hbm %s1682_s0, %s1050_s12  ;;  %s218_s17 = scalar_lea.vmem [#allocation2], %s1049_s13 }
  0x13   : > { %s225_s18 = sshll.u32 %s218_s17, 4  ;;  %p1476_p13 = pnand %p1197_p10, %p1448_p5  ;;  %s1480_s18 = int_to_ptr.vmem [resolvable:$true] %s225_s18 }
  0x14   : > { %s215_s20 = scalar_lea.sflag [#allocation3], %s214_s11  ;;  %s1265_s26 = scalar_lea.hbm %s1472_s16, 64 }
  0x15   : > { %p1266_p2 = scmp.ne.s32.totalorder %s1472_s16, %s1265_s26  ;;  %p1267_p3 = pneg %p1476_p13 }
  0x16   : > { %s1270_s7 = scalar_lea.hbm %s1682_s0, 128  ;;  %p1271_p5 = scmp.lt.u32.totalorder %s1472_s16, %s1682_s0 }
  0x17   : > { %p1268_p4 = pnand %p1267_p3, %p1266_p2  ;;  %p1272_p8 = scmp.lt.u32.totalorder %s1270_s7, %s1265_s26 }
  0x18   : > { %p1274_p9 = scmp.lt.u32.totalorder %s1265_s26, %s1472_s16 }
  0x19   : > { %p1269_p7 = pneg %p1268_p4  ;;  %p1273_p10 = por %p1272_p8, %p1271_p5 }
  0x1b   : > { %p1275_p0 = por %p1274_p9, %p1273_p10 }
  0x1d   : > { %p1276_p1 = pnand %p1275_p0, %p1269_p7 }
  0x1f   : > { %1279 = shalt.err (!%p1276_p1)
}
  0x20   : > { %s1280_s11 = scalar_lea.vmem %s1480_s18, 64  ;;  %s1363_s14 = smov [#allocation2]  }
  0x21   : > { %p1281_p2 = scmp.ne.s32.totalorder %s1480_s18, %s1280_s11  ;;  %s1285_s15 = sshll.u32 %s1363_s14, 4  ;;  %s1286_s15 = int_to_ptr.vmem [resolvable:$false] %s1285_s15 }
  0x22   : > { %s1287_s17 = scalar_lea.vmem %s1286_s15, 128  ;;  %p1288_p11 = scmp.lt.s32.totalorder %s1480_s18, %s1286_s15 }
  0x23   : > { %p1283_p4 = pnand %p1281_p2, %p1267_p3  ;;  %p1289_p5 = scmp.lt.s32.totalorder %s1287_s17, %s1280_s11 }
  0x25   : > { %p1284_p12 = pneg %p1283_p4  ;;  %p1290_p8 = por %p1289_p5, %p1288_p11 }
  0x27   : > { %p1291_p9 = pnand %p1290_p8, %p1284_p12 }
  0x29   : > { %1294 = shalt.err (!%p1291_p9)
}
  0x2a   : > { %1192 = dma.hbm_to_vmem [thread:$0]  (!%p1476_p13), %s1472_s16, 64, %s1480_s18, %s215_s20  }
  0x2b   : > { %p1695_p0 = scmp.lt.s32.totalorder %s1361_s24, 3  ;;  %p1696_p1 = scmp.ge.s32.totalorder %s1361_s24, 1 }
  0x2d   : > { %p239_p3 = pnand %p1696_p1, %p1695_p0 }
  0x2e   : > { %s1514_s26 = sand.u32 (!%p239_p3), 1, %s1353_s22  }
  0x2f   : > { %242 = sbr.rel (%p239_p3) target bundleno = 1522 (0x5f2), region = 44  ;;  %s1052_s28 = sshll.u32 (!%p239_p3), %s1514_s26, 2 }
  0x30   : > { %s245_s29 = scalar_lea.sflag (!%p239_p3), [#allocation3], %s1514_s26  ;;  %s248_s7 = scalar_lea.vmem (!%p239_p3), [#allocation2], %s1052_s28 }
  0x36   : > { %1340 = dma.done.wait (%p1452_p6), %s245_s29, 64  }
  0x37   : > { %1342 = vsyncadd (%p1452_p6), %s245_s29, 4294967232  ;;  %p282_p11 = scmp.lt.s32.totalorder %s1430_s25, 1  ;;  %v1364_v0 = vmov 0.0   ;;  %vm1365_vm0 = vmmov 0   ;;  %v1240_v1 = vld [vmem:[%s1684_s2] sm:$0xff]   ;;  %v1241_v2 = vld [vmem:[%s1684_s2 + $0x8] sm:$0xff]  }
  0x38   : > { %1109 = vmatprep.subr.bf16.mxu1 %v1364_v0  ;;  %1113 = vmatprep.mubr.msk.bf16.mxu1 %vm1365_vm0, %v1364_v0  ;;  %v288_v3 = vld [vmem:[%s248_s7] sm:$0xf]  ;;  %vm320_vm1 = vcmask 261120   ;;  %v1243_v5 = vld [vmem:[%s1685_s3 + $0x8] sm:$0xff]   ;;  %vm427_vm2 = vcmask 130048   ;;  %s1366_s7 = smov 96  }
  0x39   : > { %1125 = vmatprep.subr.bf16.mxu0 %v1364_v0  ;;  %1127 = vmatprep.mubr.msk.bf16.mxu0 %vm1365_vm0, %v1364_v0  ;;  %s283_s16 = scalar_select %p282_p11, %s1430_s25, 1  ;;  %v1242_v4 = vld [vmem:[%s1685_s3] sm:$0xff]   ;;  %vm872_vm3 = vcmask 392192   ;;  %vm905_vm4 = vcmask 523264  }
  0x3a   : > { %1110 = vmatpush3.bf16.msra.mxu1 %v1240_v1  ;;  %s1368_s18 = smov 80   ;;  %s1369_s19 = smov 64  }
  0x3b   : > { %s1081_s8 = sshll.u32 %s283_s16, 3  ;;  %1111 = vmatprep.subr.bf16.mxu1 %v1364_v0  ;;  %s1367_s16 = smov 112  }
  0x3c   : > { %s286_s14 = scalar_lea.vmem %s1683_s1, %s1081_s8  ;;  %s1370_s8 = smov 32  }
  0x3d   : > { %v1244_v6 = vld [vmem:[%s286_s14] sm:$0xff]   ;;  %s1371_s20 = smov 16   ;;  %s1372_s12 = smov 48  }
  0x3e   : > { %1112 = vmatpush3.bf16.msra.mxu1 %v1241_v2  ;;  %p1697_p12 = scmp.ne.s32.totalorder %s1692_s9, 0  ;;  %s1373_s17 = smov [#allocation5]  }
  0x3f   : > { %1117 = vmatprep.subr.bf16.mxu1 %v1364_v0  ;;  %s1299_s28 = sshll.u32 %s1373_s17, 4  ;;  %s1300_s28 = int_to_ptr.vmem [resolvable:$false] %s1299_s28 }
  0x40   : > { %s1301_s29 = scalar_lea.vmem %s1300_s28, 256 }
  0x41   : > { %1114 = vmatmul.mubr.msk.bf16.vlgmr.msra.gmra.mrb[0].mxu1 %vm320_vm1, %v288_v3 }
  0x42   : > { %1118 = vmatpush3.bf16.msra.mxu1 %v1242_v4  ;;  %1121 = vmatprep.mubr.msk.bf16.mxu1 %vm1365_vm0, %v1364_v0 }
  0x43   : > { %1119 = vmatprep.subr.bf16.mxu1 %v1364_v0 }
  0x46   : > { %1120 = vmatpush3.bf16.msra.mxu1 %v1243_v5 }
  0x47   : > { %1131 = vmatprep.subr.bf16.mxu1 %v1364_v0 }
  0x49   : > { %1122 = vmatmul.mubr.msk.bf16.vlgmr.msra.gmra.mrb[4].mxu1 %vm320_vm1, %v1244_v6 }
  0x4a   : > { %1133 = vmatprep.mubr.msk.bf16.mxu1 %vm1365_vm0, %v1364_v0 }
 0x114   : > { %v358_v7 = vpop.f32.mrb[0].mxu1 }
 0x115   : > { %v1115_v8 = vpop.f32.mrb[1].mxu1  ;;  %v425_v17 = vpack.c.bf16 %v358_v7, %v358_v7 }
 0x116   : > { %v361_v9 = vpop.f32.mrb[2].mxu1 }
 0x117   : > { %v1116_v10 = vpop.f32.mrb[3].mxu1 }
 0x11c   : > { %v418_v11 = vpop.f32.mrb[4].mxu1 }
 0x11d   : > { %v1123_v12 = vpop.f32.mrb[5].mxu1 }
 0x11e   : > { %v421_v13 = vpop.f32.mrb[6].mxu1 }
 0x11f   : > { %v1555_v14 = vpack.c.bf16 %v421_v13, %v418_v11  ;;  %v1124_v15 = vpop.f32.mrb[7].mxu1 }
 0x121   : > { %644 = vrot.lane.b32.xlu1 %v1555_v14, %s1366_s7  ;;  %536 = vrot.lane.b32.xlu0 %v1555_v14, %s1367_s16  ;;  %v432_v16 = vsel %vm427_vm2, %v1555_v14, 0 }
 0x122   : > { %1126 = vmatpush3.bf16.xpose.msra.mxu0 %v432_v16 }
 0x123   : > { %1137 = vmatprep.subr.bf16.mxu0 %v1364_v0 }
 0x125   : > { %642 = vrot.lane.b32.xlu1 %v425_v17, %s1366_s7  ;;  %534 = vrot.lane.b32.xlu0 %v425_v17, %s1367_s16  ;;  %s1053_s16 = sshll.u32 %s1514_s26, 3 }
 0x129   : > { %750 = vrot.lane.b32.xlu1 %v425_v17, %s1368_s18  ;;  %752 = vrot.lane.b32.xlu0 %v1555_v14, %s1368_s18 }
 0x12a   : > { %1128 = vmatmul.mubr.msk.bf16.vlgmr.msra.gmra.mrb[0].mxu0 %vm427_vm2, %v425_v17 }
 0x12b   : > { %1139 = vmatprep.mubr.msk.bf16.mxu0 %vm1365_vm0, %v1364_v0 }
 0x193   : > { %v537_v18 = vpop.permute.xlu0 %536  ;;  %v645_v20 = vpop.permute.xlu1 %644 }
 0x194   : > { %v542_v19 = vsel %vm427_vm2, %v537_v18, 0  ;;  %v650_v22 = vsel %vm427_vm2, %v645_v20, 0 }
 0x195   : > { %1138 = vmatpush3.bf16.xpose.msra.mxu0 %v542_v19 }
 0x196   : > { %1149 = vmatprep.subr.bf16.mxu0 %v1364_v0 }
 0x197   : > { %v535_v21 = vpop.permute.xlu0 %534  ;;  %v643_v24 = vpop.permute.xlu1 %642 }
 0x19b   : > { %v753_v23 = vpop.permute.xlu0 %752  ;;  %v751_v26 = vpop.permute.xlu1 %750 }
 0x19c   : > { %1140 = vmatmul.mubr.msk.bf16.vlgmr.msra.gmra.mrb[4].mxu0 %vm427_vm2, %v535_v21  ;;  %v758_v25 = vsel %vm427_vm2, %v753_v23, 0 }
 0x19d   : > { %1150 = vmatpush3.bf16.xpose.msra.mxu0 %v650_v22  ;;  %1151 = vmatprep.mubr.msk.bf16.mxu0 %vm1365_vm0, %v1364_v0 }
 0x19e   : > { %1161 = vmatprep.subr.bf16.mxu0 %v1364_v0 }
 0x1a4   : > { %1152 = vmatmul.mubr.msk.bf16.vlgmr.msra.gmra.mrb[8].mxu0 %vm427_vm2, %v643_v24 }
 0x1a5   : > { %1162 = vmatpush3.bf16.xpose.msra.mxu0 %v758_v25  ;;  %1163 = vmatprep.mubr.msk.bf16.mxu0 %vm1365_vm0, %v1364_v0 }
 0x1a6   : > { %1173 = vmatprep.subr.bf16.mxu0 %v1364_v0 }
 0x1ac   : > { %1164 = vmatmul.mubr.msk.bf16.vlgmr.msra.gmra.mrb[12].mxu0 %vm427_vm2, %v751_v26 }
 0x1ad   : > { %1181 = vmatprep.mubr.msk.bf16.mxu0 %vm1365_vm0, %v1364_v0 }
 0x1fd   : > { %v468_v27 = vpop.f32.mrb[0].mxu0 }
 0x1fe   : > { %v1129_v28 = vpop.f32.mrb[1].mxu0  ;;  %v474_v29 = vsel %vm427_vm2, %v468_v27, -inf }
 0x1ff   : > { %475 = vmax.xlane.f32.xlu0 %v474_v29  ;;  %v471_v30 = vpop.f32.mrb[2].mxu0  ;;  %v1245_v28 = vld [vmem:[%s1686_s4] sm:$0xff]   ;;  %v1246_v29 = vld [vmem:[%s1686_s4 + $0x8] sm:$0xff]  }
 0x200   : > { %v1130_v31 = vpop.f32.mrb[3].mxu0  ;;  %1174 = vmatpush3.bf16.msra.mxu0 %v1245_v28  ;;  %v1247_v30 = vld [vmem:[%s1686_s4 + $0x10] sm:$0xff]  }
 0x201   : > { %1175 = vmatprep.subr.bf16.mxu0 %v1364_v0 }
 0x204   : > { %1176 = vmatpush3.bf16.msra.mxu0 %v1246_v29 }
 0x205   : > { %1177 = vmatprep.subr.bf16.mxu0 %v1364_v0 }
 0x208   : > { %1178 = vmatpush3.bf16.msra.mxu0 %v1247_v30 }
 0x209   : > { %1179 = vmatprep.subr.bf16.mxu0 %v1364_v0 }
 0x26f   : > { %v578_v32 = vpop.f32.mrb[4].mxu0 }
 0x270   : > { %v1141_v33 = vpop.f32.mrb[5].mxu0  ;;  %v584_v34 = vsel %vm427_vm2, %v578_v32, -inf }
 0x271   : > { %585 = vmax.xlane.f32.xlu1 %v584_v34  ;;  %v581_v35 = vpop.f32.mrb[6].mxu0 }
 0x272   : > { %v1142_v36 = vpop.f32.mrb[7].mxu0  ;;  %v1248_v35 = vld [vmem:[%s1686_s4 + $0x18] sm:$0xff]  }
 0x273   : > { %1180 = vmatpush3.bf16.msra.mxu0 %v1248_v35 }
 0x277   : > { %v686_v37 = vpop.f32.mrb[8].mxu0 }
 0x278   : > { %v1153_v38 = vpop.f32.mrb[9].mxu0  ;;  %v692_v39 = vsel %vm427_vm2, %v686_v37, -inf }
 0x279   : > { %693 = vmax.xlane.f32.xlu0 %v692_v39  ;;  %v689_v40 = vpop.f32.mrb[10].mxu0 }
 0x27a   : > { %v1154_v41 = vpop.f32.mrb[11].mxu0 }
 0x27f   : > { %v794_v42 = vpop.f32.mrb[12].mxu0 }
 0x280   : > { %v1165_v43 = vpop.f32.mrb[13].mxu0  ;;  %v800_v44 = vsel %vm427_vm2, %v794_v42, -inf }
 0x281   : > { %801 = vmax.xlane.f32.xlu0 %v800_v44  ;;  %v797_v45 = vpop.f32.mrb[14].mxu0 }
 0x282   : > { %v1166_v46 = vpop.f32.mrb[15].mxu0 }
 0x28c   : > { %v476_v47 = vpop.xlane.xlu0 %475 }
 0x28d   : > { %v477_v48 = vsub.f32 %v468_v27, %v476_v47 }
 0x28f   : > { %v478_v49 = vmul.f32 1.442695, %v477_v48 }
 0x291   : > { %1249 = vpow2.f32 %v478_v49 }
 0x29b   : > { %v1250_v50 = vpop.eup %1249 }
 0x29c   : > { %v480_v51 = vsel %vm427_vm2, %v1250_v50, 0.0 }
 0x29d   : > { %481 = vadd.xlane.f32.xlu1 %v480_v51 }
 0x2ae   : > { %487 = vrot.lane.b32.xlu1 %v1555_v14, %s1369_s19 }
 0x2fe   : > { %v586_v52 = vpop.xlane.xlu1 %585 }
 0x2ff   : > { %v587_v53 = vsub.f32 %v578_v32, %v586_v52 }
 0x301   : > { %v588_v54 = vmul.f32 1.442695, %v587_v53 }
 0x303   : > { %1251 = vpow2.f32 %v588_v54 }
 0x306   : > { %v694_v55 = vpop.xlane.xlu0 %693 }
 0x307   : > { %v695_v56 = vsub.f32 %v686_v37, %v694_v55 }
 0x309   : > { %v696_v57 = vmul.f32 1.442695, %v695_v56 }
 0x30b   : > { %1253 = vpow2.f32 %v696_v57 }
 0x30d   : > { %v1252_v58 = vpop.eup %1251 }
 0x30e   : > { %v802_v59 = vpop.xlane.xlu0 %801  ;;  %v590_v60 = vsel %vm427_vm2, %v1252_v58, 0.0 }
 0x30f   : > { %v803_v61 = vsub.f32 %v794_v42, %v802_v59  ;;  %591 = vadd.xlane.f32.xlu0 %v590_v60 }
 0x311   : > { %v804_v62 = vmul.f32 1.442695, %v803_v61 }
 0x313   : > { %1255 = vpow2.f32 %v804_v62 }
 0x315   : > { %v1254_v63 = vpop.eup %1253 }
 0x316   : > { %v698_v1 = vsel %vm427_vm2, %v1254_v63, 0.0 }
 0x317   : > { %699 = vadd.xlane.f32.xlu1 %v698_v1 }
 0x31d   : > { %v1256_v2 = vpop.eup %1255 }
 0x31e   : > { %v806_v3 = vsel %vm427_vm2, %v1256_v2, 0.0 }
 0x31f   : > { %807 = vadd.xlane.f32.xlu0 %v806_v3 }
 0x328   : > { %704 = vrot.lane.b32.xlu1 %v1555_v14, %s1370_s8 }
 0x32a   : > { %v482_v4 = vpop.xlane.xlu1 %481 }
 0x32b   : > { %1257 = vrcp.f32 %v482_v4 }
 0x32c   : > { %812 = vrot.lane.b32.xlu1 %v1555_v14, %s1371_s20 }
 0x32e   : > { %v488_v5 = vpop.permute.xlu1 %487 }
 0x32f   : > { %1132 = vmatpush3.bf16.msra.mxu1 %v488_v5 }
 0x330   : > { %1143 = vmatprep.subr.bf16.mxu1 %v1364_v0 }
 0x335   : > { %v1258_v6 = vpop.eup %1257  ;;  %596 = vrot.lane.b32.xlu0 %v1555_v14, %s1372_s12 }
 0x336   : > { %v484_v7 = vmul.f32 %v1258_v6, %v1250_v50  ;;  %v1071_v50 = vld [vmem:[%s1687_s5] ss:$0 sm:$0xff] }
 0x338   : > { %v485_v8 = vpack.c.bf16 %v484_v7, %v484_v7 }
 0x33a   : > { %1134 = vmatmul.mubr.msk.bf16.vlgmr.msra.gmra.mrb[8].mxu1 %vm427_vm2, %v485_v8 }
 0x33b   : > { %1145 = vmatprep.mubr.msk.bf16.mxu1 %vm1365_vm0, %v1364_v0 }
 0x39c   : > { %v592_v9 = vpop.xlane.xlu0 %591 }
 0x39d   : > { %1259 = vrcp.f32 %v592_v9 }
 0x3a4   : > { %v700_v10 = vpop.xlane.xlu1 %699 }
 0x3a5   : > { %1261 = vrcp.f32 %v700_v10 }
 0x3a7   : > { %v1260_v11 = vpop.eup %1259 }
 0x3a8   : > { %v594_v13 = vmul.f32 %v1260_v11, %v1252_v58  ;;  %v705_v17 = vpop.permute.xlu1 %704 }
 0x3aa   : > { %v595_v16 = vpack.c.bf16 %v594_v13, %v594_v13 }
 0x3ac   : > { %v808_v12 = vpop.xlane.xlu0 %807  ;;  %v813_v21 = vpop.permute.xlu1 %812 }
 0x3ad   : > { %1263 = vrcp.f32 %v808_v12 }
 0x3af   : > { %v1262_v14 = vpop.eup %1261 }
 0x3b0   : > { %v597_v15 = vpop.permute.xlu0 %596  ;;  %v702_v18 = vmul.f32 %v1262_v14, %v1254_v63 }
 0x3b1   : > { %1144 = vmatpush3.bf16.msra.mxu1 %v597_v15 }
 0x3b2   : > { %1155 = vmatprep.subr.bf16.mxu1 %v1364_v0  ;;  %v703_v19 = vpack.c.bf16 %v702_v18, %v702_v18 }
 0x3b4   : > { %1146 = vmatmul.mubr.msk.bf16.vlgmr.msra.gmra.mrb[12].mxu1 %vm427_vm2, %v595_v16 }
 0x3b5   : > { %1156 = vmatpush3.bf16.msra.mxu1 %v705_v17  ;;  %1157 = vmatprep.mubr.msk.bf16.mxu1 %vm1365_vm0, %v1364_v0 }
 0x3b6   : > { %1167 = vmatprep.subr.bf16.mxu1 %v1364_v0 }
 0x3b7   : > { %v1264_v20 = vpop.eup %1263 }
 0x3b8   : > { %v810_v22 = vmul.f32 %v1264_v20, %v1256_v2 }
 0x3ba   : > { %v811_v23 = vpack.c.bf16 %v810_v22, %v810_v22 }
 0x3bc   : > { %1158 = vmatmul.mubr.msk.bf16.vlgmr.msra.gmra.mrb[16].mxu1 %vm427_vm2, %v703_v19 }
 0x3bd   : > { %1168 = vmatpush3.bf16.msra.mxu1 %v813_v21  ;;  %1169 = vmatprep.mubr.msk.bf16.mxu1 %vm1365_vm0, %v1364_v0 }
 0x3c4   : > { %1170 = vmatmul.mubr.msk.bf16.vlgmr.msra.gmra.mrb[20].mxu1 %vm427_vm2, %v811_v23 }
 0x40d   : > { %v527_v24 = vpop.f32.mrb[8].mxu1 }
 0x40e   : > { %v1135_v25 = vpop.f32.mrb[9].mxu1 }
 0x40f   : > { %v530_v26 = vpop.f32.mrb[10].mxu1 }
 0x410   : > { %v1136_v27 = vpop.f32.mrb[11].mxu1 }
 0x487   : > { %v636_v31 = vpop.f32.mrb[12].mxu1 }
 0x488   : > { %859 = vrot.lane.b32.xlu0 %v636_v31, %s1371_s20  ;;  %v1147_v32 = vpop.f32.mrb[13].mxu1  ;;  %s281_s20 = scalar_lea.vmem [#allocation5], %s1053_s16 }
 0x489   : > { %v639_v33 = vpop.f32.mrb[14].mxu1 }
 0x48a   : > { %v1148_v34 = vpop.f32.mrb[15].mxu1 }
 0x48f   : > { %v744_v36 = vpop.f32.mrb[16].mxu1 }
 0x490   : > { %863 = vrot.lane.b32.xlu1 %v744_v36, %s1370_s8  ;;  %v1159_v37 = vpop.f32.mrb[17].mxu1  ;;  %s1078_s8 = sshll.u32 %s1430_s25, 7  ;;  %s951_s25 = scalar_lea.sflag [#allocation4], %s1514_s26 }
 0x491   : > { %v747_v38 = vpop.f32.mrb[18].mxu1  ;;  %s1637_s14 = scalar_lea.hbm %s1688_s6, %s1078_s8 }
 0x492   : > { %v1160_v39 = vpop.f32.mrb[19].mxu1 }
 0x497   : > { %v852_v40 = vpop.f32.mrb[20].mxu1 }
 0x498   : > { %867 = vrot.lane.b32.xlu0 %v852_v40, %s1372_s12  ;;  %v1171_v41 = vpop.f32.mrb[21].mxu1  ;;  %s964_s12 = sshll.u32 %s281_s20, 4  ;;  %s1639_s12 = int_to_ptr.vmem [resolvable:$true] %s964_s12 }
 0x499   : > { %v855_v42 = vpop.f32.mrb[22].mxu1  ;;  %s1295_s15 = scalar_lea.vmem %s1639_s12, 128  ;;  %p1302_p10 = scmp.lt.s32.totalorder %s1639_s12, %s1300_s28 }
 0x49a   : > { %v1172_v0 = vpop.f32.mrb[23].mxu1  ;;  %p1296_p6 = scmp.ne.s32.totalorder %s1639_s12, %s1295_s15  ;;  %p1303_p2 = scmp.lt.s32.totalorder %s1301_s29, %s1295_s15 }
 0x49c   : > { %p1297_p13 = pnand %p1296_p6, %p1697_p12  ;;  %p1304_p4 = por %p1303_p2, %p1302_p10 }
 0x49e   : > { %p1298_p7 = pneg %p1297_p13 }
 0x4a0   : > { %p1305_p5 = pnand %p1304_p4, %p1298_p7 }
 0x4fa   : > { %v860_v43 = vpop.permute.xlu0 %859 }
 0x4fb   : > { %v870_v45 = vsel %vm427_vm2, %v527_v24, %v860_v43 }
 0x502   : > { %v864_v44 = vpop.permute.xlu1 %863 }
 0x503   : > { %v871_v46 = vsel %vm320_vm1, %v870_v45, %v864_v44 }
 0x50a   : > { %v868_v47 = vpop.permute.xlu0 %867 }
 0x50b   : > { %v873_v48 = vsel %vm872_vm3, %v871_v46, %v868_v47 }
 0x50c   : > { %v874_v49 = vpack.c.bf16 %v873_v48, %v873_v48 }
 0x50e   : > { %1182 = vmatmul.mubr.msk.bf16.vlgmr.msra.gmra.mrb[16].mxu0 %vm905_vm4, %v874_v49 }
 0x5e1   : > { %v943_v51 = vpop.f32.mrb[16].mxu0 }
 0x5e2   : > { %v944_v52 = vadd.f32 %v1071_v50, %v943_v51  ;;  %v1183_v53 = vpop.f32.mrb[17].mxu0 }
 0x5e3   : > { %v946_v54 = vpop.f32.mrb[18].mxu0 }
 0x5e4   : > { %v1184_v55 = vpop.f32.mrb[19].mxu0  ;;  %949 = vst.msk [vmem:[%s281_s20] sm:$0xff] %vm320_vm1, %v944_v52 }
 0x5e5   : > { %1308 = shalt.err (!%p1305_p5)
}
 0x5e6   : > { %s1309_s26 = scalar_lea.hbm %s1637_s14, 128  ;;  %s1313_s18 = scalar_lea.hbm %s1688_s6, 256 }
 0x5e7   : > { %p1310_p8 = scmp.ne.s32.totalorder %s1637_s14, %s1309_s26  ;;  %p1314_p1 = scmp.lt.u32.totalorder %s1637_s14, %s1688_s6 }
 0x5e8   : > { %p1315_p3 = scmp.lt.u32.totalorder %s1313_s18, %s1309_s26  ;;  %p1317_p6 = scmp.lt.u32.totalorder %s1309_s26, %s1637_s14 }
 0x5e9   : > { %p1311_p9 = pnand %p1310_p8, %p1697_p12 }
 0x5ea   : > { %p1316_p11 = por %p1315_p3, %p1314_p1 }
 0x5eb   : > { %p1312_p0 = pneg %p1311_p9 }
 0x5ec   : > { %p1318_p13 = por %p1317_p6, %p1316_p11 }
 0x5ee   : > { %p1319_p7 = pnand %p1318_p13, %p1312_p0 }
 0x5f0   : > { %1322 = shalt.err (!%p1319_p7)
}
 0x5f1   : > { %1187 = dma.vmem_to_hbm [thread:$0]  (%p1697_p12), %s1639_s12, 128, %s1637_s14, %s951_s25  }
 0x5f2 PF: > { %s976_s20 = sand.u32 1, %s1349_s21   ;;  %p1698_p10 = scmp.ne.s32.totalorder %s1693_s10, 0 }
 0x5f3   : > { %p1699_p2 = scmp.ge.s32.totalorder %s1361_s24, 2  ;;  %s977_s13 = scalar_lea.sflag [#allocation4], %s976_s20 }
 0x5f5   : > { %p1194_p4 = pnand %p1699_p2, %p1698_p10 }
 0x5f7   : > { %1344 = dma.done.wait (!%p1194_p4), %s977_s13, 128  }
 0x5f8   : > { %1346 = vsyncadd (!%p1194_p4), %s977_s13, 4294967168  ;;  %p19_p5 = scmp.ge.s32.totalorder %s1434_s27, 4   ;;  %s1700_s21 = smov %s1353_s22 }
 0x5f9   : > { %s1701_s22 = smov %s1357_s23  ;;  %s1702_s23 = smov %s1446_s30 }
 0x5fa   : > { %s1703_s24 = smov %s1434_s27  ;;  %21 = sbr.rel (!%p19_p5) target bundleno = 5 (0x5), region = 92 }
 0x601   :  { %982 = vsyncpa [#allocation3], 1 }
 0x602   :  { %984 = vsyncpa [#allocation3 + $0x1], 1 }
 0x603   :  { %985 = vsyncpa [#allocation4], 1 }
 0x604   :  { %987 = vsyncpa [#allocation4 + $0x1], 1 }

</bundles_post_ra>
